<compile_context>
chip_gen: v7x
topology: tpu7x:2x2x1
jax: 0.10.0
libtpu: 0.0.40
codegen_flags: <defaults>
</compile_context>

<pallas_src>
import math

import jax
import jax.numpy as jnp
from jax import lax
from jax.experimental import pallas as pl
from jax.experimental.pallas import tpu as pltpu


def aggregator_kernel(h_ref, nei_ref, ws_ref, wn_ref, b_ref, out_ref):
    # Both contractions run on the MXU; the /(K+1) mean and the neighbor sum
    # are folded into the (block-diagonal) weights, so there is no separate
    # reduce or divide on the VPU/XLU.
    z = jnp.dot(nei_ref[...], wn_ref[...], preferred_element_type=jnp.float32)
    z = z + jnp.dot(h_ref[...], ws_ref[...], preferred_element_type=jnp.float32)
    z = z + b_ref[...]
    out_ref[...] = jnp.maximum(z, 0.0).astype(out_ref.dtype)   # activation=relu
    # NOTE: the PyTorch forward also computes a `norm` tensor and discards it;
    # it is dead code and deliberately omitted here (perf-review item 2).


def _block_diag(w, p):
    """(C, F) -> (p*C, p*F) block-diagonal with `w` repeated on the diagonal."""
    if p == 1:
        return w
    c, f = w.shape
    eye = jnp.eye(p, dtype=w.dtype)
    return jnp.einsum("pq,cf->pcqf", eye, w).reshape(p * c, p * f)


def _pick_tile_rows(n_rows, requested):
    """Largest multiple-of-8 divisor of n_rows <= requested, preferring >=2
    grid steps so the parallel axis can shard across v7x's two TensorCores."""
    divs = [t for t in range(8, n_rows + 1, 8)
            if n_rows % t == 0 and t <= requested]
    multi = [t for t in divs if n_rows // t >= 2]
    if multi:
        return max(multi)
    if divs:
        return max(divs)
    return n_rows


def aggregator_forward(h, nei, w, b, *, tile_n=2048):
    """h: (N, F_in), nei: (N, K, F_in), w: (F_in, F_out), b: (1, F_out)."""
    n, f_in = h.shape
    k = nei.shape[1]
    f_out = w.shape[1]

    h = h.astype(jnp.float32)
    nei = nei.astype(jnp.float32)
    w = w.astype(jnp.float32)
    b = jnp.reshape(b, (1, f_out)).astype(jnp.float32)
    # TODO(synk): on v6e/v7x, storing h/nei as bfloat16 in HBM (upcasting in the
    # kernel) would halve the dominant DMA traffic; kept f32 to preserve the
    # PyTorch module's numerics exactly.

    # Pack P node rows per physical 128-lane output row (block-diagonal
    # weights); packed row-major layout == (N, F_out) row-major, so the final
    # reshape is free and every store is an unmasked, lane-dense vst.
    if f_out <= 128 and 128 % f_out == 0:
        p = 128 // f_out
        while p > 1 and n % p != 0:
            p //= 2
    else:
        p = 1

    n_rows = n // p
    inv = jnp.float32(1.0 / (k + 1))
    ws = _block_diag(w * inv, p)                      # (p*F_in,    p*F_out)
    wn = _block_diag(jnp.tile(w, (k, 1)) * inv, p)    # (p*K*F_in,  p*F_out)
    bp = jnp.tile(b, (1, p))                          # (1, p*F_out)

    h_p = h.reshape(n_rows, p * f_in)                 # free row-major regroup
    nei_p = nei.reshape(n_rows, p * k * f_in)         # lane-dense, contiguous

    tile_rows = _pick_tile_rows(n_rows, max(1, tile_n // p))
    grid = (n_rows // tile_rows,)

    flops = 2 * n_rows * (p * f_in + p * k * f_in) * (p * f_out)
    bytes_accessed = 4 * (h.size + nei.size + n * f_out
                          + ws.size + wn.size + bp.size)

    out_p = pl.pallas_call(
        aggregator_kernel,
        out_shape=jax.ShapeDtypeStruct((n_rows, p * f_out), jnp.float32),
        grid_spec=pltpu.PrefetchScalarGridSpec(
            num_scalar_prefetch=0,
            grid=grid,
            in_specs=[
                pl.BlockSpec((tile_rows, p * f_in), lambda i: (i, 0)),
                pl.BlockSpec((tile_rows, p * k * f_in), lambda i: (i, 0)),
                pl.BlockSpec((p * f_in, p * f_out), lambda i: (0, 0)),
                pl.BlockSpec((p * k * f_in, p * f_out), lambda i: (0, 0)),
                pl.BlockSpec((1, p * f_out), lambda i: (0, 0)),
            ],
            out_specs=pl.BlockSpec((tile_rows, p * f_out), lambda i: (i, 0)),
        ),
        compiler_params=pltpu.CompilerParams(
            dimension_semantics=("parallel",),
            vmem_limit_bytes=32 * 1024 * 1024,
        ),
        cost_estimate=pl.CostEstimate(
            flops=flops, transcendentals=0, bytes_accessed=bytes_accessed),
    )(h_p, nei_p, ws, wn, bp)

    return out_p.reshape(n, f_out)


def init_params(key, in_feats, out_feats):
    """Params matching nn.Linear + xavier_uniform_(gain=calculate_gain('relu'))."""
    k_w, k_b = jax.random.split(key)
    gain = math.sqrt(2.0)
    bound_w = gain * math.sqrt(6.0 / (in_feats + out_feats))
    # PyTorch weight is (out, in); store transposed (in, out) for the kernel.
    w = jax.random.uniform(k_w, (in_feats, out_feats), jnp.float32,
                           -bound_w, bound_w)
    bound_b = 1.0 / math.sqrt(in_feats)                 # Linear bias default
    b = jax.random.uniform(k_b, (1, out_feats), jnp.float32, -bound_b, bound_b)
    return w, b


def reference_forward(h, nei, w, b):
    agg = (jnp.sum(nei, axis=1) + h) / (nei.shape[1] + 1)
    z = jnp.dot(agg, w, precision=lax.Precision.HIGHEST) + b
    return jnp.maximum(z, 0.0)


if __name__ == "__main__":
    N, K, F_IN, F_OUT = 256, 4, 32, 32

    key = jax.random.PRNGKey(0)
    k_h, k_nei, k_p = jax.random.split(key, 3)
    h = jax.random.normal(k_h, (N, F_IN), jnp.float32)
    nei = jax.random.normal(k_nei, (N, K, F_IN), jnp.float32)
    w, b = init_params(k_p, F_IN, F_OUT)

    out = jax.block_until_ready(aggregator_forward(h, nei, w, b))
    ref = reference_forward(h, nei, w, b)

    assert out.shape == (N, F_OUT)
    err = float(jnp.max(jnp.abs(out - ref)))
    assert jnp.allclose(out, ref, atol=1e-4, rtol=1e-4), err

    print("KERNEL_OK")
</pallas_src>

<mosaic_0001>
module attributes {stable_mosaic.version = 11 : i64} {
  func.func @aggregator_kernel(%arg0: i32, %arg1: memref<32x128xf32, #tpu.memory_space<vmem>>, %arg2: memref<32x512xf32, #tpu.memory_space<vmem>>, %arg3: memref<128x128xf32, #tpu.memory_space<vmem>>, %arg4: memref<512x128xf32, #tpu.memory_space<vmem>>, %arg5: memref<1x128xf32, #tpu.memory_space<vmem>>, %arg6: memref<32x128xf32, #tpu.memory_space<vmem>>) attributes {dimension_semantics = [#tpu.dimension_semantics<parallel>], iteration_bounds = array<i64: 2>, scalar_prefetch = 0 : i64, scratch_operands = 0 : i64, tpu.core_type = #tpu.core_type<tc>, window_params = [{transform_indices = @transform_0, window_bounds = array<i64: 32, 128>}, {transform_indices = @transform_1, window_bounds = array<i64: 32, 512>}, {pipeline_mode = #tpu.pipeline_mode<synchronous>, transform_indices = @transform_2, window_bounds = array<i64: 128, 128>}, {pipeline_mode = #tpu.pipeline_mode<synchronous>, transform_indices = @transform_3, window_bounds = array<i64: 512, 128>}, {pipeline_mode = #tpu.pipeline_mode<synchronous>, transform_indices = @transform_4, window_bounds = array<i64: 1, 128>}, {transform_indices = @transform_5, window_bounds = array<i64: 32, 128>}]} {
    %c0 = arith.constant 0 : index
    %c0_0 = arith.constant 0 : index
    %0 = vector.load %arg2[%c0, %c0_0] : memref<32x512xf32, #tpu.memory_space<vmem>>, vector<32x512xf32>
    %c0_1 = arith.constant 0 : index
    %c0_2 = arith.constant 0 : index
    %1 = vector.load %arg4[%c0_1, %c0_2] : memref<512x128xf32, #tpu.memory_space<vmem>>, vector<512x128xf32>
    %cst = arith.constant dense<0.000000e+00> : vector<32x128xf32>
    %2 = tpu.matmul %0, %1, %cst {dimension_numbers = #tpu.dot_dimension_numbers<[1], [0], [0], [1], [0, 0, 1, 1], [], []>} : vector<32x512xf32>, vector<512x128xf32>, vector<32x128xf32> -> vector<32x128xf32>
    %c0_3 = arith.constant 0 : index
    %c0_4 = arith.constant 0 : index
    %3 = vector.load %arg1[%c0_3, %c0_4] : memref<32x128xf32, #tpu.memory_space<vmem>>, vector<32x128xf32>
    %c0_5 = arith.constant 0 : index
    %c0_6 = arith.constant 0 : index
    %4 = vector.load %arg3[%c0_5, %c0_6] : memref<128x128xf32, #tpu.memory_space<vmem>>, vector<128x128xf32>
    %cst_7 = arith.constant dense<0.000000e+00> : vector<32x128xf32>
    %5 = tpu.matmul %3, %4, %cst_7 {dimension_numbers = #tpu.dot_dimension_numbers<[1], [0], [0], [1], [0, 0, 1, 1], [], []>} : vector<32x128xf32>, vector<128x128xf32>, vector<32x128xf32> -> vector<32x128xf32>
    %6 = arith.addf %2, %5 : vector<32x128xf32>
    %c0_8 = arith.constant 0 : index
    %c0_9 = arith.constant 0 : index
    %7 = vector.load %arg5[%c0_8, %c0_9] : memref<1x128xf32, #tpu.memory_space<vmem>>, vector<1x128xf32>
    %8 = vector.broadcast %7 : vector<1x128xf32> to vector<32x128xf32>
    %9 = arith.addf %6, %8 : vector<32x128xf32>
    %cst_10 = arith.constant 0.000000e+00 : f32
    %10 = vector.broadcast %cst_10 : f32 to vector<32x128xf32>
    %11 = arith.maximumf %9, %10 : vector<32x128xf32>
    %c0_11 = arith.constant 0 : index
    %c0_12 = arith.constant 0 : index
    %12 = vector.load %arg6[%c0_11, %c0_12] : memref<32x128xf32, #tpu.memory_space<vmem>>, vector<32x128xf32>
    tpu.vector_store %arg6[%c0_11, %c0_12], %11 {strides = array<i32>} : memref<32x128xf32, #tpu.memory_space<vmem>>, vector<32x128xf32>,
    return
  }
  func.func @transform_0(%arg0: i32) -> (i32, i32) {
    %c0_i32 = arith.constant 0 : i32
    %c0_i32_0 = arith.constant 0 : i32
    return %arg0, %c0_i32 : i32, i32
  }
  func.func @transform_1(%arg0: i32) -> (i32, i32) {
    %c0_i32 = arith.constant 0 : i32
    %c0_i32_0 = arith.constant 0 : i32
    return %arg0, %c0_i32 : i32, i32
  }
  func.func @transform_2(%arg0: i32) -> (i32, i32) {
    %c0_i32 = arith.constant 0 : i32
    %c0_i32_0 = arith.constant 0 : i32
    %c0_i32_1 = arith.constant 0 : i32
    return %c0_i32, %c0_i32_0 : i32, i32
  }
  func.func @transform_3(%arg0: i32) -> (i32, i32) {
    %c0_i32 = arith.constant 0 : i32
    %c0_i32_0 = arith.constant 0 : i32
    %c0_i32_1 = arith.constant 0 : i32
    return %c0_i32, %c0_i32_0 : i32, i32
  }
  func.func @transform_4(%arg0: i32) -> (i32, i32) {
    %c0_i32 = arith.constant 0 : i32
    %c0_i32_0 = arith.constant 0 : i32
    %c0_i32_1 = arith.constant 0 : i32
    return %c0_i32, %c0_i32_0 : i32, i32
  }
  func.func @transform_5(%arg0: i32) -> (i32, i32) {
    %c0_i32 = arith.constant 0 : i32
    %c0_i32_0 = arith.constant 0 : i32
    return %arg0, %c0_i32 : i32, i32
  }
}

</mosaic_0001>

<bundles_post_ra>
// kernel: tpu_custom_call.1
= control target key start
LH: loop header
LB: loop body
LE: loop exit
PB: predicated region body
PF: predicated region fallthrough
CT: control target
= control target key end

     0   :  { %s1747_s0 = inlined_call_operand.hbm [shape: f32[64,128], index: 0, kind: input, shape index: {}]   ;;  %s1748_s1 = inlined_call_operand.hbm [shape: f32[64,512], index: 1, kind: input, shape index: {}]   ;;  %s1749_s2 = inlined_call_operand.hbm [shape: f32[128,128], index: 2, kind: input, shape index: {}]   ;;  %s1750_s3 = inlined_call_operand.hbm [shape: f32[512,128], index: 3, kind: input, shape index: {}]   ;;  %s1751_s4 = inlined_call_operand.vmem [shape: f32[1,128], index: 4, kind: input, shape index: {}]   ;;  %s1752_s5 = inlined_call_operand.hbm [shape: f32[64,128], index: 5, kind: output, shape index: {}]  }
   0x1   :  { %1757 = sst [smem:[#allocation16_spill]] %s1747_s0 }
   0x2   :  { %1758 = sst [smem:[#allocation17_spill]] %s1749_s2 }
   0x3   :  { %1759 = sst [smem:[#allocation18_spill]] %s1750_s3 }
   0x4   :  { %10 = vsyncpa [#allocation3], 0 }
   0x5   :  { %12 = vsyncpa [#allocation3 + $0x1], 0 }
   0x6   :  { %13 = vsyncpa [#allocation6], 0 }
   0x7   :  { %15 = vsyncpa [#allocation6 + $0x1], 0 }
   0x8   :  { %16 = vsyncpa [#allocation9], 0 }
   0x9   :  { %17 = vsyncpa [#allocation4], 0 }
   0xa   :  { %19 = vsyncpa [#allocation4 + $0x1], 0  ;;  %s1420_s18 = smov 0   ;;  %s1422_s19 = smov 0  }
   0xb   :  { %s1424_s20 = smov 0   ;;  %s1426_s21 = smov 0  }
   0xc LB: > { %s1441_s22 = sadd.s32 4294967295, %s1377_s21   ;;  %s819_s23 = sadd.s32 4294967294, %s1377_s21   ;;  %s1377_s21 = sphi %s1426_s21, %s1783_s21   ;;  %s1373_s20 = sphi %s1424_s20, %s1782_s20   ;;  %s1369_s19 = sphi %s1422_s19, %s1781_s19   ;;  %s1365_s18 = sphi %s1420_s18, %s1780_s18  }
   0xd   : > { %p45_p0 = scmp.ne.s32.totalorder %s1369_s19, %s1365_s18  ;;  %p1753_p1 = scmp.eq.s32.totalorder %s1441_s22, 0 }
   0xe   : > { %p164_p3 = scmp.eq.s32.totalorder %s819_s23, 1  ;;  %p820_p5 = scmp.ge.s32.totalorder %s1377_s21, 1 }
   0xf   : > { %p1450_p4 = por %p1753_p1, %p45_p0  ;;  %p171_p7 = scmp.lt.s32.totalorder %s1377_s21, 3 }
  0x10   : > { %p1455_p6 = por %p164_p3, %p45_p0  ;;  %s1379_s27 = smov [#allocation7]  }
  0x11   : > { %s1760_s24 = scalar_select %p1450_p4, 1, 0 }
  0x12   : > { %s1761_s25 = scalar_select %p1455_p6, 1, 0 }
  0x13   : > { %p1460_p8 = pnand %p820_p5, %p171_p7  ;;  %s183_s28 = sshll.u32 %s1379_s27, 4  ;;  %s1464_s28 = int_to_ptr.vmem [resolvable:$true] %s183_s28 }
  0x14   : > { %s1380_s30 = smov [#allocation8]   ;;  %s1764_s2 = sld [smem:[#allocation17_spill]] }
  0x15   : > { %p1119_p9 = pneg %p1460_p8  ;;  %s196_s6 = sshll.u32 %s1380_s30, 4  ;;  %s1475_s6 = int_to_ptr.vmem [resolvable:$true] %s196_s6 }
  0x17   : > { %p1471_p11 = pnand %p1119_p9, %p1753_p1 }
  0x19   : > { %p1185_p13 = pneg %p1471_p11 }
  0x1a   : > { %s1183_s9 = scalar_lea.hbm %s1764_s2, 2048 }
  0x1b   : > { %p1184_p12 = scmp.ne.s32.totalorder %s1764_s2, %s1183_s9  ;;  %p1190_p5 = scmp.lt.u32.totalorder %s1183_s9, %s1764_s2 }
  0x1d   : > { %p1186_p0 = pnand %p1185_p13, %p1184_p12 }
  0x1f   : > { %p1187_p3 = pneg %p1186_p0 }
  0x21   : > { %p1192_p7 = pnand %p1190_p5, %p1187_p3 }
  0x23   : > { %1195 = shalt.err (!%p1192_p7)
}
  0x24   : > { %s1196_s14 = scalar_lea.vmem %s1464_s28, 2048  ;;  %p1204_p2 = scmp.lt.s32.totalorder %s1464_s28, %s1464_s28 }
  0x25   : > { %p1197_p9 = scmp.ne.s32.totalorder %s1464_s28, %s1196_s14  ;;  %p1205_p12 = scmp.lt.s32.totalorder %s1196_s14, %s1196_s14 }
  0x27   : > { %p1199_p10 = pnand %p1197_p9, %p1185_p13  ;;  %p1206_p0 = por %p1205_p12, %p1204_p2 }
  0x29   : > { %p1200_p1 = pneg %p1199_p10 }
  0x2b   : > { %p1207_p6 = pnand %p1206_p0, %p1200_p1 }
  0x2d   : > { %1210 = shalt.err (!%p1207_p6)
}
  0x2e   : > { %s1754_s15 = smov 128   ;;  %s1382_s16 = smov 8  }
  0x2f   : > { %1122 = dma.hbm_to_vmem [thread:$0]  (!%p1471_p11), %s1764_s2, 2048, %s1464_s28, [#allocation6], %s1754_s15, %s1754_s15, %s1382_s16  }
  0x30   : > { %s1765_s3 = sld [smem:[#allocation18_spill]] }
  0x36   : > { %s1211_s7 = scalar_lea.hbm %s1765_s3, 8192 }
  0x37   : > { %p1212_p1 = scmp.ne.s32.totalorder %s1765_s3, %s1211_s7  ;;  %p1218_p10 = scmp.lt.u32.totalorder %s1211_s7, %s1765_s3 }
  0x39   : > { %p1214_p2 = pnand %p1212_p1, %p1185_p13 }
  0x3b   : > { %p1215_p6 = pneg %p1214_p2 }
  0x3d   : > { %p1220_p3 = pnand %p1218_p10, %p1215_p6 }
  0x3f   : > { %1223 = shalt.err (!%p1220_p3)
}
  0x40   : > { %s1224_s28 = scalar_lea.vmem %s1475_s6, 8192  ;;  %p1232_p12 = scmp.lt.s32.totalorder %s1475_s6, %s1475_s6 }
  0x41   : > { %p1225_p5 = scmp.ne.s32.totalorder %s1475_s6, %s1224_s28  ;;  %p1233_p0 = scmp.lt.s32.totalorder %s1224_s28, %s1224_s28 }
  0x43   : > { %p1227_p7 = pnand %p1225_p5, %p1185_p13  ;;  %p1234_p1 = por %p1233_p0, %p1232_p12 }
  0x45   : > { %p1228_p9 = pneg %p1227_p7 }
  0x47   : > { %p1235_p2 = pnand %p1234_p1, %p1228_p9 }
  0x49   : > { %1238 = shalt.err (!%p1235_p2)
}
  0x4a   : > { %1125 = dma.hbm_to_vmem [thread:$0]  (!%p1471_p11), %s1765_s3, 8192, %s1475_s6, [#allocation9], %s1754_s15, %s1754_s15, %s1382_s16  }
  0x4b   : > { %s1536_s29 = sadd.s32 1, %s1377_s21   ;;  %s32_s14 = sadd.s32 1, %s1373_s20 }
  0x4c   : > { %s29_s17 = ssub.s32 %s1377_s21, %s1536_s29  ;;  %p39_p13 = scmp.ne.s32.totalorder %s1373_s20, %s1369_s19 }
  0x4d   : > { %p30_p6 = scmp.eq.s32.totalorder %s29_s17, 0  ;;  %p40_p10 = scmp.eq.s32.totalorder %s1377_s21, 0 }
  0x4e   : > { %p1766_p3 = scmp.eq.s32.totalorder %s1441_s22, 1  ;;  %p1139_p7 = scmp.lt.s32.totalorder %s1377_s21, 2 }
  0x4f   : > { %s1552_s27 = scalar_select %p30_p6, %s1373_s20, %s32_s14  }
  0x50   : > { %p1546_p5 = por %p1766_p3, %p39_p13  ;;  %p41_p9 = por %p40_p10, %p39_p13 }
  0x51   : > { %s1555_s30 = sand.u32 1, %s1373_s20   ;;  %s843_s7 = sshll.u32 %s1377_s21, 9 }
  0x52   : > { %s1767_s23 = scalar_select %p1546_p5, 1, 0 }
  0x53   : > { %s824_s6 = sshll.u32 %s1555_s30, 5  ;;  %s1768_s0 = sld [smem:[#allocation16_spill]] }
  0x54   : > { %s217_s11 = scalar_lea.vmem [#allocation2], %s824_s6  ;;  %p1566_p11 = pnand %p1139_p7, %p41_p9 }
  0x55   : > { %s224_s28 = sshll.u32 %s217_s11, 4  ;;  %s827_s14 = sshll.u32 %s1555_s30, 7  ;;  %s1564_s28 = int_to_ptr.vmem [resolvable:$true] %s224_s28 }
  0x56   : > { %s214_s17 = scalar_lea.sflag [#allocation3], %s1555_s30  ;;  %p1241_p0 = pneg %p1566_p11 }
  0x59   : > { %s1562_s10 = scalar_lea.hbm %s1768_s0, %s843_s7  ;;  %s1244_s9 = scalar_lea.hbm %s1768_s0, 1024 }
  0x5a   : > { %s1239_s8 = scalar_lea.hbm %s1562_s10, 512  ;;  %p1245_p13 = scmp.lt.u32.totalorder %s1562_s10, %s1768_s0 }
  0x5b   : > { %p1240_p12 = scmp.ne.s32.totalorder %s1562_s10, %s1239_s8  ;;  %p1246_p6 = scmp.lt.u32.totalorder %s1244_s9, %s1239_s8 }
  0x5c   : > { %p1248_p3 = scmp.lt.u32.totalorder %s1239_s8, %s1562_s10 }
  0x5d   : > { %p1242_p1 = pnand %p1241_p0, %p1240_p12  ;;  %p1247_p10 = por %p1246_p6, %p1245_p13 }
  0x5f   : > { %p1243_p2 = pneg %p1242_p1  ;;  %p1249_p7 = por %p1248_p3, %p1247_p10 }
  0x61   : > { %p1250_p9 = pnand %p1249_p7, %p1243_p2 }
  0x63   : > { %1253 = shalt.err (!%p1250_p9)
}
  0x64   : > { %s1254_s13 = scalar_lea.vmem %s1564_s28, 512  ;;  %s1383_s6 = smov [#allocation2]  }
  0x65   : > { %p1255_p12 = scmp.ne.s32.totalorder %s1564_s28, %s1254_s13  ;;  %s1259_s7 = sshll.u32 %s1383_s6, 4  ;;  %s1260_s7 = int_to_ptr.vmem [resolvable:$false] %s1259_s7 }
  0x66   : > { %s1261_s15 = scalar_lea.vmem %s1260_s7, 1024  ;;  %p1262_p4 = scmp.lt.s32.totalorder %s1564_s28, %s1260_s7 }
  0x67   : > { %p1257_p1 = pnand %p1255_p12, %p1241_p0  ;;  %p1263_p13 = scmp.lt.s32.totalorder %s1261_s15, %s1254_s13 }
  0x69   : > { %p1258_p5 = pneg %p1257_p1  ;;  %p1264_p6 = por %p1263_p13, %p1262_p4 }
  0x6b   : > { %p1265_p10 = pnand %p1264_p6, %p1258_p5 }
  0x6d   : > { %1268 = shalt.err (!%p1265_p10)
}
  0x6e   : > { %s1770_s8 = smov 128   ;;  %s845_s9 = sshll.u32 %s1377_s21, 11 }
  0x6f   : > { %1129 = dma.hbm_to_vmem [thread:$0]  (!%p1566_p11), %s1562_s10, 512, %s1564_s28, %s214_s17, %s1770_s8, %s1770_s8, %s1382_s16  }
  0x70   : > { %s1607_s6 = scalar_lea.hbm %s1748_s1, %s845_s9  ;;  %s238_s7 = scalar_lea.vmem [#allocation5], %s827_s14 }
  0x71   : > { %s246_s15 = sshll.u32 %s238_s7, 4  ;;  %s1771_s0 = sand.u32 1, %s1377_s21   ;;  %s1611_s15 = int_to_ptr.vmem [resolvable:$true] %s246_s15 }
  0x72   : > { %s1615_s2 = scalar_lea.sflag [#allocation6], %s1771_s0  ;;  %s1269_s3 = scalar_lea.hbm %s1607_s6, 2048 }
  0x73   : > { %p1270_p4 = scmp.ne.s32.totalorder %s1607_s6, %s1269_s3  ;;  %s1274_s30 = scalar_lea.hbm %s1748_s1, 4096 }
  0x74   : > { %p1275_p3 = scmp.lt.u32.totalorder %s1607_s6, %s1748_s1  ;;  %p1276_p7 = scmp.lt.u32.totalorder %s1274_s30, %s1269_s3 }
  0x75   : > { %p1272_p5 = pnand %p1270_p4, %p1241_p0  ;;  %p1278_p12 = scmp.lt.u32.totalorder %s1269_s3, %s1607_s6 }
  0x76   : > { %p1277_p9 = por %p1276_p7, %p1275_p3 }
  0x77   : > { %p1273_p2 = pneg %p1272_p5 }
  0x78   : > { %p1279_p1 = por %p1278_p12, %p1277_p9 }
  0x7a   : > { %p1280_p13 = pnand %p1279_p1, %p1273_p2 }
  0x7c   : > { %1283 = shalt.err (!%p1280_p13)
}
  0x7d   : > { %s1284_s0 = scalar_lea.vmem %s1611_s15, 2048  ;;  %s1384_s14 = smov [#allocation5]  }
  0x7e   : > { %p1285_p6 = scmp.ne.s32.totalorder %s1611_s15, %s1284_s0  ;;  %s1289_s8 = sshll.u32 %s1384_s14, 4  ;;  %s1290_s8 = int_to_ptr.vmem [resolvable:$false] %s1289_s8 }
  0x7f   : > { %s1291_s9 = scalar_lea.vmem %s1290_s8, 4096  ;;  %p1292_p5 = scmp.lt.s32.totalorder %s1611_s15, %s1290_s8 }
  0x80   : > { %p1287_p10 = pnand %p1285_p6, %p1241_p0  ;;  %p1293_p3 = scmp.lt.s32.totalorder %s1291_s9, %s1284_s0 }
  0x82   : > { %p1288_p4 = pneg %p1287_p10  ;;  %p1294_p7 = por %p1293_p3, %p1292_p5 }
  0x84   : > { %p1295_p9 = pnand %p1294_p7, %p1288_p4 }
  0x86   : > { %1298 = shalt.err (!%p1295_p9)
}
  0x87   : > { %s1385_s3 = smov 512   ;;  %s1386_s11 = smov 32  }
  0x88   : > { %1132 = dma.hbm_to_vmem [thread:$0]  (!%p1566_p11), %s1607_s6, 2048, %s1611_s15, %s1615_s2, %s1385_s3, %s1385_s3, %s1386_s11  }
  0x89   : > { %258 = sbr.rel (%p1460_p8) target bundleno = 462 (0x1ce), region = 40  ;;  %s1644_s13 = sand.u32 (!%p1460_p8), 1, %s1369_s19  }
  0x8a   : > { %s832_s7 = sshll.u32 (!%p1460_p8), %s1644_s13, 5  ;;  %s261_s16 = scalar_lea.sflag (!%p1460_p8), [#allocation3], %s1644_s13 }
  0x8b   : > { %s1650_s10 = scalar_lea.vmem (!%p1460_p8), [#allocation2], %s832_s7  ;;  %p1772_p0 = scmp.ne.s32.totalorder (!%p1460_p8), %s1760_s24, 0 }
  0x90   : > { %1344 = dma.done.wait (%p1772_p0), %s261_s16, 512  }
  0x91   : > { %1346 = vsyncadd (%p1772_p0), %s261_s16, 4294966784  ;;  %s269_s2 = sand.u32 1, %s1441_s22   ;;  %s833_s26 = sshll.u32 %s1644_s13, 7 }
  0x92   : > { %s270_s12 = scalar_lea.sflag [#allocation6], %s269_s2  ;;  %s1658_s6 = scalar_lea.vmem [#allocation5], %s833_s26 }
  0x93   : > { %1348 = dma.done.wait (%p1772_p0), %s270_s12, 2048  }
  0x94   : > { %1350 = vsyncadd (%p1772_p0), %s270_s12, 4294965248  ;;  %p1773_p8 = scmp.eq.s32.totalorder %s1441_s22, 0 }
  0x96   : > { %1352 = dma.done.wait (%p1773_p8), [#allocation6], 2048   ;;  %p1774_p11 = pmov %p1773_p8 }
  0x97   : > { %p1775_p2 = pmov %p1773_p8 }
  0x98   : > { %1354 = vsyncadd (%p1774_p11), [#allocation6], 4294965248 }
  0x99   : > { %1356 = dma.done.wait (%p1775_p2), [#allocation9], 8192   ;;  %p1776_p12 = pmov %p1775_p2 }
  0x9a   : > { %v400_v0 = vld [vmem:[#allocation7] sm:$0xff]  ;;  %v401_v1 = vld [vmem:[#allocation7 + $0x8] sm:$0xff]  ;;  %v402_v9 = vld [vmem:[#allocation7 + $0x10] sm:$0xff]  ;;  %s312_s30 = scalar_lea.vmem [#allocation10], %s832_s7  ;;  %s846_s17 = sshll.u32 %s1441_s22, 9 }
  0x9b   : > { %1358 = vsyncadd (%p1776_p12), [#allocation9], 4294959104  ;;  %v348_v2 = vld [vmem:[#allocation8 + $0x80] sm:$0xff]  ;;  %v993_v3 = vpack.c.bf16 %v401_v1, %v400_v0  ;;  %v349_v4 = vld [vmem:[#allocation8 + $0x88] sm:$0xff]  ;;  %s704_s28 = sshll.u32 %s312_s30, 4  ;;  %s1703_s8 = scalar_lea.hbm %s1752_s5, %s846_s17  ;;  %s1698_s28 = int_to_ptr.vmem [resolvable:$true] %s704_s28 }
  0x9c   : > { %v332_v5 = vld [vmem:[#allocation8] sm:$0xff]  ;;  %v333_v6 = vld [vmem:[#allocation8 + $0x8] sm:$0xff]  ;;  %v1025_v7 = vpack.c.bf16 %v349_v4, %v348_v2  ;;  %v403_v10 = vld [vmem:[#allocation7 + $0x18] sm:$0xff]  ;;  %s691_s9 = scalar_lea.sflag [#allocation4], %s1644_s13  ;;  %s1299_s22 = scalar_lea.vmem %s1698_s28, 512 }
  0x9d   : > { %v1027_v8 = vpack.c.bf16 %v333_v6, %v332_v5  ;;  %v350_v11 = vld [vmem:[#allocation8 + $0x90] sm:$0xff]  ;;  %994 = vmatprep.subr.bf16.mxu0 %v993_v3  ;;  %v997_v12 = vpack.c.bf16 %v403_v10, %v402_v9  ;;  %v351_v13 = vld [vmem:[#allocation8 + $0x98] sm:$0xff]  ;;  %v404_v17 = vld [vmem:[#allocation7 + $0x20] sm:$0xff]  ;;  %p1300_p1 = scmp.ne.s32.totalorder %s1698_s28, %s1299_s22  ;;  %p1777_p13 = scmp.ne.s32.totalorder %s1767_s23, 0 }
  0x9e   : > { %v334_v14 = vld [vmem:[#allocation8 + $0x10] sm:$0xff]  ;;  %v335_v15 = vld [vmem:[#allocation8 + $0x18] sm:$0xff]  ;;  %1026 = vmatprep.subr.bf16.mxu1 %v1025_v7  ;;  %996 = vmatpush3.bf16.msra.mxu0 %v993_v3  ;;  %v1029_v16 = vpack.c.bf16 %v351_v13, %v350_v11  ;;  %v405_v18 = vld [vmem:[#allocation7 + $0x28] sm:$0xff]  ;;  %s1387_s3 = smov [#allocation10]  }
  0x9f   : > { %v352_v19 = vld [vmem:[#allocation8 + $0xa0] sm:$0xff]  ;;  %1028 = vmatpush3.bf16.msra.mxu1 %v1027_v8  ;;  %998 = vmatprep.subr.bf16.mxu0 %v997_v12  ;;  %v1031_v20 = vpack.c.bf16 %v335_v15, %v334_v14  ;;  %v1001_v21 = vpack.c.bf16 %v405_v18, %v404_v17  ;;  %v353_v22 = vld [vmem:[#allocation8 + $0xa8] sm:$0xff]  ;;  %v406_v26 = vld [vmem:[#allocation7 + $0x30] sm:$0xff]  ;;  %p1301_p6 = pnand %p1300_p1, %p1777_p13  ;;  %s1303_s11 = sshll.u32 %s1387_s3, 4  ;;  %s1304_s11 = int_to_ptr.vmem [resolvable:$false] %s1303_s11 }
  0xa0   : > { %v336_v23 = vld [vmem:[#allocation8 + $0x20] sm:$0xff]  ;;  %1030 = vmatprep.subr.bf16.mxu1 %v1029_v16  ;;  %v1033_v24 = vpack.c.bf16 %v353_v22, %v352_v19  ;;  %v337_v25 = vld [vmem:[#allocation8 + $0x28] sm:$0xff]  ;;  %v407_v27 = vld [vmem:[#allocation7 + $0x38] sm:$0xff]  ;;  %s1305_s7 = scalar_lea.vmem %s1304_s11, 1024  ;;  %p1306_p4 = scmp.lt.s32.totalorder %s1698_s28, %s1304_s11 }
  0xa1   : > { %v354_v28 = vld [vmem:[#allocation8 + $0xb0] sm:$0xff]  ;;  %v355_v29 = vld [vmem:[#allocation8 + $0xb8] sm:$0xff]  ;;  %v1035_v30 = vpack.c.bf16 %v337_v25, %v336_v23  ;;  %v1005_v31 = vpack.c.bf16 %v407_v27, %v406_v26  ;;  %v408_v35 = vld [vmem:[#allocation7 + $0x40] sm:$0xff]  ;;  %p1302_p10 = pneg %p1301_p6  ;;  %p1307_p5 = scmp.lt.s32.totalorder %s1305_s7, %s1299_s22 }
  0xa2   : > { %1000 = vmatpush3.bf16.msra.mxu0 %v997_v12  ;;  %v338_v32 = vld [vmem:[#allocation8 + $0x30] sm:$0xff]  ;;  %v1037_v33 = vpack.c.bf16 %v355_v29, %v354_v28  ;;  %v339_v34 = vld [vmem:[#allocation8 + $0x38] sm:$0xff]  ;;  %v409_v36 = vld [vmem:[#allocation7 + $0x48] sm:$0xff] }
  0xa3   : > { %1032 = vmatpush3.bf16.msra.mxu1 %v1031_v20  ;;  %1002 = vmatprep.subr.bf16.mxu0 %v1001_v21  ;;  %v356_v37 = vld [vmem:[#allocation8 + $0xc0] sm:$0xff]  ;;  %v357_v38 = vld [vmem:[#allocation8 + $0xc8] sm:$0xff]  ;;  %v1039_v39 = vpack.c.bf16 %v339_v34, %v338_v32  ;;  %v1009_v40 = vpack.c.bf16 %v409_v36, %v408_v35  ;;  %v410_v44 = vld [vmem:[#allocation7 + $0x50] sm:$0xff]  ;;  %p1308_p3 = por %p1307_p5, %p1306_p4 }
  0xa4   : > { %1034 = vmatprep.subr.bf16.mxu1 %v1033_v24  ;;  %v340_v41 = vld [vmem:[#allocation8 + $0x40] sm:$0xff]  ;;  %v1041_v42 = vpack.c.bf16 %v357_v38, %v356_v37  ;;  %v341_v43 = vld [vmem:[#allocation8 + $0x48] sm:$0xff]  ;;  %v411_v45 = vld [vmem:[#allocation7 + $0x58] sm:$0xff] }
  0xa5   : > { %v358_v46 = vld [vmem:[#allocation8 + $0xd0] sm:$0xff]  ;;  %v359_v47 = vld [vmem:[#allocation8 + $0xd8] sm:$0xff]  ;;  %v396_v48 = vld [vmem:[%s1650_s10] sm:$0xff]  ;;  %v1043_v50 = vpack.c.bf16 %v341_v43, %v340_v41  ;;  %v1013_v51 = vpack.c.bf16 %v411_v45, %v410_v44  ;;  %p1309_p7 = pnand %p1308_p3, %p1302_p10 }
  0xa6   : > { %1004 = vmatpush3.bf16.msra.mxu0 %v1001_v21  ;;  %v317_v49 = vld [vmem:[%s1658_s6 + $0x8] sm:$0xff]  ;;  %v342_v52 = vld [vmem:[#allocation8 + $0x50] sm:$0xff]  ;;  %v1045_v53 = vpack.c.bf16 %v359_v47, %v358_v46  ;;  %v343_v54 = vld [vmem:[#allocation8 + $0x58] sm:$0xff]  ;;  %987 = vmatprep.mubr.f32.mxu0 %v396_v48 }
  0xa7   : > { %1036 = vmatpush3.bf16.msra.mxu1 %v1035_v30  ;;  %1006 = vmatprep.subr.bf16.mxu0 %v1005_v31  ;;  %v412_v55 = vld [vmem:[#allocation7 + $0x60] sm:$0xff]  ;;  %v413_v56 = vld [vmem:[#allocation7 + $0x68] sm:$0xff]  ;;  %v1047_v59 = vpack.c.bf16 %v343_v54, %v342_v52  ;;  %v414_v0 = vld [vmem:[#allocation7 + $0x70] sm:$0xff] }
  0xa8   : > { %1038 = vmatprep.subr.bf16.mxu1 %v1037_v33  ;;  %v360_v57 = vld [vmem:[#allocation8 + $0xe0] sm:$0xff]  ;;  %v361_v58 = vld [vmem:[#allocation8 + $0xe8] sm:$0xff]  ;;  %565 = vmatprep.mubr.f32.mxu1 %v317_v49  ;;  %v1017_v60 = vpack.c.bf16 %v413_v56, %v412_v55  ;;  %v415_v1 = vld [vmem:[#allocation7 + $0x78] sm:$0xff] }
  0xa9   : > { %v344_v61 = vld [vmem:[#allocation8 + $0x60] sm:$0xff]  ;;  %v1049_v62 = vpack.c.bf16 %v361_v58, %v360_v57  ;;  %v345_v63 = vld [vmem:[#allocation8 + $0x68] sm:$0xff]  ;;  %v362_v2 = vld [vmem:[#allocation8 + $0xf0] sm:$0xff]  ;;  %v1021_v5 = vpack.c.bf16 %v415_v1, %v414_v0 }
  0xaa   : > { %1008 = vmatpush3.bf16.msra.mxu0 %v1005_v31  ;;  %v363_v3 = vld [vmem:[#allocation8 + $0xf8] sm:$0xff]  ;;  %v1051_v4 = vpack.c.bf16 %v345_v63, %v344_v61  ;;  %v346_v6 = vld [vmem:[#allocation8 + $0x70] sm:$0xff]  ;;  %v380_v9 = vld [vmem:[#allocation8 + $0x180] sm:$0xff] }
  0xab   : > { %1040 = vmatpush3.bf16.msra.mxu1 %v1039_v39  ;;  %1010 = vmatprep.subr.bf16.mxu0 %v1009_v40  ;;  %v1053_v7 = vpack.c.bf16 %v363_v3, %v362_v2  ;;  %v347_v8 = vld [vmem:[#allocation8 + $0x78] sm:$0xff]  ;;  %v381_v10 = vld [vmem:[#allocation8 + $0x188] sm:$0xff]  ;;  %v364_v13 = vld [vmem:[#allocation8 + $0x100] sm:$0xff] }
  0xac   : > { %1042 = vmatprep.subr.bf16.mxu1 %v1041_v42  ;;  %v1055_v11 = vpack.c.bf16 %v347_v8, %v346_v6  ;;  %v1057_v12 = vpack.c.bf16 %v381_v10, %v380_v9  ;;  %v365_v14 = vld [vmem:[#allocation8 + $0x108] sm:$0xff]  ;;  %v382_v15 = vld [vmem:[#allocation8 + $0x190] sm:$0xff]  ;;  %v383_v16 = vld [vmem:[#allocation8 + $0x198] sm:$0xff] }
  0xad   : > { %v397_v17 = vld [vmem:[%s1650_s10 + $0x8] sm:$0xff]  ;;  %v1059_v18 = vpack.c.bf16 %v365_v14, %v364_v13  ;;  %v316_v19 = vld [vmem:[%s1658_s6] sm:$0xff]  ;;  %v366_v20 = vld [vmem:[#allocation8 + $0x110] sm:$0xff]  ;;  %v1061_v23 = vpack.c.bf16 %v383_v16, %v382_v15 }
  0xae   : > { %1012 = vmatpush3.bf16.msra.mxu0 %v1009_v40  ;;  %v367_v21 = vld [vmem:[#allocation8 + $0x118] sm:$0xff]  ;;  %v321_v22 = vld [vmem:[%s1658_s6 + $0x28] sm:$0xff]  ;;  %v384_v24 = vld [vmem:[#allocation8 + $0x1a0] sm:$0xff] }
  0xaf   : > { %1044 = vmatpush3.bf16.msra.mxu1 %v1043_v50  ;;  %1014 = vmatprep.subr.bf16.mxu0 %v1013_v51  ;;  %v385_v25 = vld [vmem:[#allocation8 + $0x1a8] sm:$0xff]  ;;  %v1063_v26 = vpack.c.bf16 %v367_v21, %v366_v20  ;;  %v398_v27 = vld [vmem:[%s1650_s10 + $0x10] sm:$0xff]  ;;  %v320_v28 = vld [vmem:[%s1658_s6 + $0x20] sm:$0xff] }
  0xb0   : > { %1046 = vmatprep.subr.bf16.mxu1 %v1045_v53  ;;  %v1065_v29 = vpack.c.bf16 %v385_v25, %v384_v24  ;;  %v368_v30 = vld [vmem:[#allocation8 + $0x120] sm:$0xff]  ;;  %v369_v31 = vld [vmem:[#allocation8 + $0x128] sm:$0xff]  ;;  %v386_v32 = vld [vmem:[#allocation8 + $0x1b0] sm:$0xff] }
  0xb1   : > { %v387_v33 = vld [vmem:[#allocation8 + $0x1b8] sm:$0xff]  ;;  %v325_v34 = vld [vmem:[%s1658_s6 + $0x48] sm:$0xff]  ;;  %v1067_v35 = vpack.c.bf16 %v369_v31, %v368_v30  ;;  %v370_v38 = vld [vmem:[#allocation8 + $0x130] sm:$0xff] }
  0xb2   : > { %1016 = vmatpush3.bf16.msra.mxu0 %v1013_v51  ;;  %v399_v36 = vld [vmem:[%s1650_s10 + $0x18] sm:$0xff]  ;;  %v1069_v37 = vpack.c.bf16 %v387_v33, %v386_v32  ;;  %v324_v40 = vld [vmem:[%s1658_s6 + $0x40] sm:$0xff]  ;;  %v389_v42 = vld [vmem:[#allocation8 + $0x1c8] sm:$0xff] }
  0xb3   : > { %1048 = vmatpush3.bf16.msra.mxu1 %v1047_v59  ;;  %1018 = vmatprep.subr.bf16.mxu0 %v1017_v60  ;;  %v371_v39 = vld [vmem:[#allocation8 + $0x138] sm:$0xff]  ;;  %v388_v41 = vld [vmem:[#allocation8 + $0x1c0] sm:$0xff]  ;;  %v329_v43 = vld [vmem:[%s1658_s6 + $0x68] sm:$0xff] }
  0xb4   : > { %1050 = vmatprep.subr.bf16.mxu1 %v1049_v62  ;;  %v1071_v44 = vpack.c.bf16 %v371_v39, %v370_v38  ;;  %v319_v45 = vld [vmem:[%s1658_s6 + $0x18] sm:$0xff]  ;;  %v1073_v46 = vpack.c.bf16 %v389_v42, %v388_v41  ;;  %v372_v47 = vld [vmem:[#allocation8 + $0x140] sm:$0xff]  ;;  %v373_v48 = vld [vmem:[#allocation8 + $0x148] sm:$0xff] }
  0xb5   : > { %v328_v49 = vld [vmem:[%s1658_s6 + $0x60] sm:$0xff]  ;;  %v390_v50 = vld [vmem:[#allocation8 + $0x1d0] sm:$0xff]  ;;  %v391_v51 = vld [vmem:[#allocation8 + $0x1d8] sm:$0xff]  ;;  %v1075_v53 = vpack.c.bf16 %v373_v48, %v372_v47 }
  0xb6   : > { %1020 = vmatpush3.bf16.msra.mxu0 %v1017_v60  ;;  %v327_v52 = vld [vmem:[%s1658_s6 + $0x58] sm:$0xff]  ;;  %v1077_v54 = vpack.c.bf16 %v391_v51, %v390_v50  ;;  %v374_v55 = vld [vmem:[#allocation8 + $0x150] sm:$0xff]  ;;  %v392_v57 = vld [vmem:[#allocation8 + $0x1e0] sm:$0xff] }
  0xb7   : > { %1052 = vmatpush3.bf16.msra.mxu1 %v1051_v4  ;;  %1022 = vmatprep.subr.bf16.mxu0 %v1021_v5  ;;  %v375_v56 = vld [vmem:[#allocation8 + $0x158] sm:$0xff]  ;;  %v393_v58 = vld [vmem:[#allocation8 + $0x1e8] sm:$0xff]  ;;  %v376_v61 = vld [vmem:[#allocation8 + $0x160] sm:$0xff] }
  0xb8   : > { %1054 = vmatprep.subr.bf16.mxu1 %v1053_v7  ;;  %v1079_v59 = vpack.c.bf16 %v375_v56, %v374_v55  ;;  %v1081_v60 = vpack.c.bf16 %v393_v58, %v392_v57  ;;  %v377_v62 = vld [vmem:[#allocation8 + $0x168] sm:$0xff]  ;;  %v394_v63 = vld [vmem:[#allocation8 + $0x1f0] sm:$0xff]  ;;  %v395_v0 = vld [vmem:[#allocation8 + $0x1f8] sm:$0xff] }
  0xb9   : > { %v1083_v1 = vpack.c.bf16 %v377_v62, %v376_v61  ;;  %v1085_v2 = vpack.c.bf16 %v395_v0, %v394_v63  ;;  %v378_v3 = vld [vmem:[#allocation8 + $0x170] sm:$0xff]  ;;  %v379_v4 = vld [vmem:[#allocation8 + $0x178] sm:$0xff] }
  0xba   : > { %1024 = vmatpush3.bf16.msra.mxu0 %v1021_v5  ;;  %v1087_v5 = vpack.c.bf16 %v379_v4, %v378_v3  ;;  %v318_v6 = vld [vmem:[%s1658_s6 + $0x10] sm:$0xff]  ;;  %v323_v8 = vld [vmem:[%s1658_s6 + $0x38] sm:$0xff] }
  0xbb   : > { %1056 = vmatpush3.bf16.msra.mxu1 %v1055_v11  ;;  %1058 = vmatprep.subr.bf16.mxu0 %v1057_v12  ;;  %v326_v7 = vld [vmem:[%s1658_s6 + $0x50] sm:$0xff]  ;;  %v331_v9 = vld [vmem:[%s1658_s6 + $0x78] sm:$0xff] }
  0xbc   : > { %1089 = vmatprep.subr.bf16.mxu1 %v1057_v12  ;;  %v322_v10 = vld [vmem:[%s1658_s6 + $0x30] sm:$0xff] }
  0xbd   : > { %988 = vmatmul.mubr.f32.vlgmr.msra.gmra.mrb[0].mxu0 %v397_v17  ;;  %v330_v11 = vld [vmem:[%s1658_s6 + $0x70] sm:$0xff] }
  0xbe   : > { %566 = vmatmul.mubr.f32.vlgmr.msra.gmra.mrb[0].mxu1 %v316_v19  ;;  %1060 = vmatpush3.bf16.msra.mxu0 %v1059_v18 }
  0xbf   : > { %1097 = vmatpush3.bf16.msra.mxu1 %v1059_v18  ;;  %570 = vmatprep.mubr.f32.mxu1 %v321_v22 }
  0xc0   : > { %1062 = vmatprep.subr.bf16.mxu0 %v1061_v23  ;;  %1090 = vmatprep.subr.bf16.mxu1 %v1061_v23 }
  0xc1   : > { %990 = vmatprep.mubr.f32.mxu0 %v398_v27 }
  0xc2   : > { %571 = vmatmul.mubr.f32.gmra.mrb[2].mxu1 %v320_v28  ;;  %1064 = vmatpush3.bf16.msra.mxu0 %v1063_v26 }
  0xc3   : > { %1098 = vmatpush3.bf16.msra.mxu1 %v1063_v26  ;;  %1066 = vmatprep.subr.bf16.mxu0 %v1065_v29 }
  0xc4   : > { %1091 = vmatprep.subr.bf16.mxu1 %v1065_v29  ;;  %575 = vmatprep.mubr.f32.mxu1 %v325_v34 }
  0xc5   : > { %991 = vmatmul.mubr.f32.gmra.mrb[2].mxu0 %v399_v36 }
  0xc6   : > { %1068 = vmatpush3.bf16.msra.mxu0 %v1067_v35  ;;  %576 = vmatmul.mubr.f32.gmra.mrb[4].mxu1 %v324_v40 }
  0xc7   : > { %1099 = vmatpush3.bf16.msra.mxu1 %v1067_v35  ;;  %1070 = vmatprep.subr.bf16.mxu0 %v1069_v37 }
  0xc8   : > { %1092 = vmatprep.subr.bf16.mxu1 %v1069_v37  ;;  %580 = vmatprep.mubr.f32.mxu1 %v329_v43  ;;  %v837_v37 = vld [vmem:[%s1751_s4] ss:$0 sm:$0xff] }
  0xc9   : > { %650 = vmatprep.mubr.f32.mxu0 %v319_v45 }
  0xca   : > { %1072 = vmatpush3.bf16.msra.mxu0 %v1071_v44  ;;  %581 = vmatmul.mubr.f32.gmra.mrb[6].mxu1 %v328_v49 }
  0xcb   : > { %1100 = vmatpush3.bf16.msra.mxu1 %v1071_v44  ;;  %1074 = vmatprep.subr.bf16.mxu0 %v1073_v46 }
  0xcc   : > { %1093 = vmatprep.subr.bf16.mxu1 %v1073_v46  ;;  %660 = vmatprep.mubr.f32.mxu1 %v327_v52 }
  0xce   : > { %1076 = vmatpush3.bf16.msra.mxu0 %v1075_v53 }
  0xcf   : > { %1101 = vmatpush3.bf16.msra.mxu1 %v1075_v53  ;;  %1078 = vmatprep.subr.bf16.mxu0 %v1077_v54 }
  0xd0   : > { %1094 = vmatprep.subr.bf16.mxu1 %v1077_v54 }
  0xd2   : > { %1080 = vmatpush3.bf16.msra.mxu0 %v1079_v59 }
  0xd3   : > { %1102 = vmatpush3.bf16.msra.mxu1 %v1079_v59  ;;  %1082 = vmatprep.subr.bf16.mxu0 %v1081_v60 }
  0xd4   : > { %1095 = vmatprep.subr.bf16.mxu1 %v1081_v60 }
  0xd6   : > { %1084 = vmatpush3.bf16.msra.mxu0 %v1083_v1 }
  0xd7   : > { %1103 = vmatpush3.bf16.msra.mxu1 %v1083_v1  ;;  %1086 = vmatprep.subr.bf16.mxu0 %v1085_v2 }
  0xd8   : > { %1096 = vmatprep.subr.bf16.mxu1 %v1085_v2 }
  0xda   : > { %1088 = vmatpush3.bf16.msra.mxu0 %v1087_v5 }
  0xdb   : > { %1104 = vmatpush3.bf16.msra.mxu1 %v1087_v5 }
  0xdd   : > { %651 = vmatmul.mubr.f32.vlgmr.msra.gmra.mrb[4].mxu0 %v318_v6 }
  0xde   : > { %661 = vmatmul.mubr.f32.vlgmr.msra.gmra.mrb[8].mxu1 %v326_v7  ;;  %655 = vmatprep.mubr.f32.mxu0 %v323_v8 }
  0xdf   : > { %665 = vmatprep.mubr.f32.mxu1 %v331_v9 }
  0xe1   : > { %656 = vmatmul.mubr.f32.gmra.mrb[6].mxu0 %v322_v10 }
  0xe2   : > { %666 = vmatmul.mubr.f32.gmra.mrb[10].mxu1 %v330_v11 }
 0x190   : > { %v989_v12 = vpop.f32.mrb[0].mxu0 }
 0x191   : > { %v899_v13 = vpop.f32.mrb[0].mxu1  ;;  %v482_v14 = vpop.f32.mrb[1].mxu0 }
 0x192   : > { %v900_v15 = vpop.f32.mrb[1].mxu1 }
 0x193   : > { %v901_v16 = vadd.f32 %v900_v15, %v899_v13 }
 0x195   : > { %v568_v17 = vadd.f32 %v901_v16, %v482_v14  ;;  %v902_v18 = vpop.f32.mrb[2].mxu1 }
 0x196   : > { %v903_v19 = vpop.f32.mrb[3].mxu1 }
 0x197   : > { %v904_v20 = vadd.f32 %v903_v19, %v902_v18 }
 0x198   : > { %v992_v21 = vpop.f32.mrb[2].mxu0 }
 0x199   : > { %v573_v22 = vadd.f32 %v989_v12, %v904_v20  ;;  %v905_v23 = vpop.f32.mrb[4].mxu1  ;;  %v492_v24 = vpop.f32.mrb[3].mxu0 }
 0x19a   : > { %v906_v25 = vpop.f32.mrb[5].mxu1 }
 0x19b   : > { %v907_v26 = vadd.f32 %v906_v25, %v905_v23 }
 0x19d   : > { %v908_v27 = vpop.f32.mrb[6].mxu1  ;;  %v578_v28 = vadd.f32 %v907_v26, %v492_v24 }
 0x19e   : > { %v909_v29 = vpop.f32.mrb[7].mxu1 }
 0x19f   : > { %v910_v30 = vadd.f32 %v909_v29, %v908_v27 }
 0x1a1   : > { %v583_v31 = vadd.f32 %v992_v21, %v910_v30 }
 0x1b0   : > { %v943_v32 = vpop.f32.mrb[4].mxu0 }
 0x1b1   : > { %v949_v33 = vpop.f32.mrb[8].mxu1  ;;  %v944_v34 = vpop.f32.mrb[5].mxu0 }
 0x1b2   : > { %v945_v35 = vadd.f32 %v944_v34, %v943_v32  ;;  %v950_v36 = vpop.f32.mrb[9].mxu1 }
 0x1b3   : > { %v951_v38 = vadd.f32 %v950_v36, %v949_v33 }
 0x1b4   : > { %v653_v39 = vadd.f32 %v945_v35, %v568_v17  ;;  %v946_v40 = vpop.f32.mrb[6].mxu0 }
 0x1b5   : > { %v663_v41 = vadd.f32 %v951_v38, %v578_v28  ;;  %v952_v42 = vpop.f32.mrb[10].mxu1  ;;  %v947_v43 = vpop.f32.mrb[7].mxu0 }
 0x1b6   : > { %v678_v44 = vadd.f32 %v837_v37, %v653_v39  ;;  %v948_v45 = vadd.f32 %v947_v43, %v946_v40  ;;  %v953_v46 = vpop.f32.mrb[11].mxu1 }
 0x1b7   : > { %v680_v47 = vadd.f32 %v837_v37, %v663_v41  ;;  %v954_v48 = vadd.f32 %v953_v46, %v952_v42 }
 0x1b8   : > { %v682_v49 = vmax.f32 %v678_v44, 0.0  ;;  %v658_v50 = vadd.f32 %v948_v45, %v573_v22 }
 0x1b9   : > { %v684_v51 = vmax.f32 %v680_v47, 0.0  ;;  %v668_v52 = vadd.f32 %v954_v48, %v583_v31 }
 0x1ba   : > { %686 = vst [vmem:[%s312_s30] sm:$0xff] %v682_v49  ;;  %v679_v53 = vadd.f32 %v837_v37, %v658_v50 }
 0x1bb   : > { %688 = vst [vmem:[%s312_s30 + $0x10] sm:$0xff] %v684_v51  ;;  %v681_v54 = vadd.f32 %v837_v37, %v668_v52 }
 0x1bc   : > { %v683_v55 = vmax.f32 %v679_v53, 0.0 }
 0x1bd   : > { %v685_v56 = vmax.f32 %v681_v54, 0.0 }
 0x1be   : > { %687 = vst [vmem:[%s312_s30 + $0x8] sm:$0xff] %v683_v55 }
 0x1bf   : > { %689 = vst [vmem:[%s312_s30 + $0x18] sm:$0xff] %v685_v56 }
 0x1c0   : > { %1312 = shalt.err (!%p1309_p7)
}
 0x1c1   : > { %s1313_s16 = scalar_lea.hbm %s1703_s8, 512  ;;  %s1317_s26 = scalar_lea.hbm %s1752_s5, 1024 }
 0x1c2   : > { %p1314_p9 = scmp.ne.s32.totalorder %s1703_s8, %s1313_s16  ;;  %p1318_p11 = scmp.lt.u32.totalorder %s1703_s8, %s1752_s5 }
 0x1c3   : > { %p1319_p2 = scmp.lt.u32.totalorder %s1317_s26, %s1313_s16  ;;  %p1321_p1 = scmp.lt.u32.totalorder %s1313_s16, %s1703_s8 }
 0x1c4   : > { %p1315_p0 = pnand %p1314_p9, %p1777_p13 }
 0x1c5   : > { %p1320_p12 = por %p1319_p2, %p1318_p11 }
 0x1c6   : > { %p1316_p8 = pneg %p1315_p0 }
 0x1c7   : > { %p1322_p6 = por %p1321_p1, %p1320_p12 }
 0x1c9   : > { %p1323_p10 = pnand %p1322_p6, %p1316_p8 }
 0x1cb   : > { %1326 = shalt.err (!%p1323_p10)
}
 0x1cc   : > { %s1388_s24 = smov 128   ;;  %s1389_s15 = smov 8  }
 0x1cd   : > { %1117 = dma.vmem_to_hbm [thread:$0]  (%p1777_p13), %s1698_s28, 512, %s1703_s8, %s691_s9, %s1388_s24, %s1388_s24, %s1389_s15  }
 0x1ce PF: > { %s719_s30 = sand.u32 1, %s1365_s18   ;;  %p1778_p4 = scmp.ne.s32.totalorder %s1761_s25, 0 }
 0x1cf   : > { %p1779_p5 = scmp.ge.s32.totalorder %s1377_s21, 2  ;;  %s720_s17 = scalar_lea.sflag [#allocation4], %s719_s30 }
 0x1d1   : > { %p1134_p3 = pnand %p1779_p5, %p1778_p4 }
 0x1d3   : > { %1360 = dma.done.wait (!%p1134_p3), %s720_s17, 512  }
 0x1d4   : > { %1362 = vsyncadd (!%p1134_p3), %s720_s17, 4294966784  ;;  %p22_p7 = scmp.ge.s32.totalorder %s1536_s29, 4   ;;  %s1780_s18 = smov %s1369_s19 }
 0x1d5   : > { %s1781_s19 = smov %s1373_s20  ;;  %s1782_s20 = smov %s1552_s27 }
 0x1d6   : > { %s1783_s21 = smov %s1536_s29  ;;  %24 = sbr.rel (!%p22_p7) target bundleno = 12 (0xc), region = 106 }
 0x1dd   :  { %725 = vsyncpa [#allocation3], 1 }
 0x1de   :  { %727 = vsyncpa [#allocation3 + $0x1], 1 }
 0x1df   :  { %728 = vsyncpa [#allocation6], 1 }
 0x1e0   :  { %730 = vsyncpa [#allocation6 + $0x1], 1 }
 0x1e1   :  { %731 = vsyncpa [#allocation9], 1 }
 0x1e2   :  { %732 = vsyncpa [#allocation4], 1 }
 0x1e3   :  { %734 = vsyncpa [#allocation4 + $0x1], 1 }

</bundles_post_ra>
